<compile_context>
chip_gen: v7x
topology: tpu7x:2x2x1
jax: 0.10.0
libtpu: 0.0.40
codegen_flags: <defaults>
</compile_context>

<pallas_src>
import functools
import math

import jax
import jax.numpy as jnp
from jax import lax
from jax.experimental import pallas as pl
from jax.experimental.pallas import tpu as pltpu


def _gaussian_noise_tpu_kernel(seed_ref, x_ref, o_ref, *, sigma: float):
    """Hardware PRNG + cheap Box-Muller + fused scale, all on half-tiles."""
    # Per-tile seed (user seed word, tile index word) -> independent noise per tile.
    pltpu.prng_seed(seed_ref[0], pl.program_id(0))

    tm, c = x_ref.shape
    half = c // 2  # wrapper guarantees c == 1024, so half == 512 (lane aligned)

    # One 32-bit random word per OUTPUT PAIR: hi 16 bits -> u1, lo 16 bits -> u2.
    bits = pltpu.prng_random_bits((tm, half))
    if bits.dtype != jnp.uint32:
        bits = lax.bitcast_convert_type(bits, jnp.uint32)

    exp_one = jnp.uint32(0x3F800000)
    mant_msk = jnp.uint32(0x007FFF80)
    m1 = ((bits >> jnp.uint32(9)) & mant_msk) | exp_one   # hi16 -> mantissa [22:7]
    m2 = ((bits << jnp.uint32(7)) & mant_msk) | exp_one   # lo16 -> mantissa [22:7]
    u1 = jnp.float32(2.0) - lax.bitcast_convert_type(m1, jnp.float32)  # (0, 1], log-safe
    u2 = lax.bitcast_convert_type(m2, jnp.float32) - jnp.float32(1.0)  # [0, 1)

    # Box-Muller radius on the EUP.
    r = jnp.sqrt(jnp.float32(-2.0) * jnp.log(u1))

    # cos(2*pi*u2) via quarter-period folding + even polynomial on [0, pi/2]
    # (|err| < ~3e-5 — plenty for a noise regularizer; no generic range reduction).
    w = jnp.abs(u2 - jnp.float32(0.5))                       # [0, 0.5]; cos(2pi u2) = -cos(2pi w)
    flip = w > jnp.float32(0.25)
    w2 = jnp.where(flip, jnp.float32(0.5) - w, w)            # [0, 0.25]
    sgn_c = jnp.where(flip, jnp.float32(1.0), jnp.float32(-1.0))
    th2 = jnp.float32(4.0 * math.pi * math.pi) * (w2 * w2)   # theta^2, theta in [0, pi/2]
    c_abs = (jnp.float32(1.0)
             - th2 * (jnp.float32(0.5)
             - th2 * (jnp.float32(1.0 / 24.0)
             - th2 * (jnp.float32(1.0 / 720.0)
             - th2 * jnp.float32(1.0 / 40320.0)))))
    cos_t = sgn_c * c_abs
    # sin(2*pi*u2) = sign * sqrt(1 - cos^2): one EUP sqrt + select, no sin polynomial.
    sin_abs = jnp.sqrt(jnp.maximum(jnp.float32(0.0), jnp.float32(1.0) - cos_t * cos_t))
    sin_t = jnp.where(u2 < jnp.float32(0.5), sin_abs, -sin_abs)

    one = jnp.float32(1.0)
    s = jnp.float32(sigma)
    # out = x + z * (sigma * x)  ==  x * (1 + sigma * z); half-tile ref slices keep
    # everything fused on (tm, half) shapes (no full-tile intermediates).
    o_ref[:, :half] = (x_ref[:, :half] * (one + s * (r * cos_t))).astype(o_ref.dtype)
    o_ref[:, half:] = (x_ref[:, half:] * (one + s * (r * sin_t))).astype(o_ref.dtype)


def _gaussian_noise_fallback_kernel(x_ref, z_ref, o_ref, *, sigma: float):
    """Non-TPU fallback: noise z ~ N(0,1) is generated outside the kernel."""
    o_ref[...] = (x_ref[...] *
                  (jnp.float32(1.0) + jnp.float32(sigma) * z_ref[...])).astype(o_ref.dtype)


def _chip_config():
    """(block_bytes, vmem_limit_bytes) tuned per TPU generation."""
    vmem_phys = None
    try:
        vmem_phys = getattr(pltpu.get_tpu_info(), "vmem_capacity_bytes", None)
    except Exception:
        vmem_phys = None
    if vmem_phys is not None and vmem_phys >= 96 * 1024 * 1024:
        # v5e / v6e: 128 MiB VMEM -> bigger blocks amortize grid-step overhead.
        return 4 * 1024 * 1024, 64 * 1024 * 1024
    # v7x (64 MiB VMEM) or unknown: conservative blocks, explicit 32 MiB scope
    # still covers 2x(in+out) double buffers plus half-tile elementwise temps.
    return 2 * 1024 * 1024, 32 * 1024 * 1024


def _slab_layout(total: int, block_bytes: int):
    """Lane-dense (rows, 1024) f32 slab + row-tile size."""
    cols = 1024                                   # widest unmasked vld/vst runs
    padded = total + ((-total) % cols)            # <= 4 KiB of padding
    rows = padded // cols
    # Row-tile sized to ~block_bytes (f32), multiple of 8 sublanes.
    max_rows = max(8, (block_bytes // (4 * cols)) // 8 * 8)
    if rows > 8:
        # Guarantee >= 2 grid steps so v7x's two TensorCores both get work.
        half_rows = -(-rows // 2)
        half_rows = -(-half_rows // 8) * 8
        max_rows = min(max_rows, half_rows)
    tile_rows = rows if rows <= max_rows else max_rows
    return padded, rows, cols, tile_rows


def gaussian_noise(x, *, sigma: float = 0.01, training: bool = True,
                   is_relative_detach: bool = True, seed: int = 0):
    """Pallas TPU implementation of GaussianNoise.forward."""
    # TODO(synk): is_relative_detach only affects autodiff (stop_gradient on the
    # sigma*x scale); forward value is identical and this pallas_call defines no
    # custom VJP, so the kernel is forward-only.
    del is_relative_detach

    if (not training) or sigma == 0.0:
        return x

    orig_shape, orig_dtype = x.shape, x.dtype
    total = x.size

    # TODO(synk): kernel computes in f32 (32-bit PRNG word + f32 bit-trick);
    # non-f32 inputs are round-tripped through f32 rather than tiled natively.
    xf = x.reshape(-1).astype(jnp.float32)

    block_bytes, vmem_limit = _chip_config()
    padded, rows, cols, tile_rows = _slab_layout(total, block_bytes)
    if padded != total:
        xf = jnp.pad(xf, (0, padded - total))
    x2d = xf.reshape(rows, cols)
    grid = (pl.cdiv(rows, tile_rows),)

    if jax.default_backend() == "tpu":
        seed_arr = jnp.array([seed], dtype=jnp.int32)
        out2d = pl.pallas_call(
            functools.partial(_gaussian_noise_tpu_kernel, sigma=float(sigma)),
            out_shape=jax.ShapeDtypeStruct(x2d.shape, x2d.dtype),
            grid_spec=pltpu.PrefetchScalarGridSpec(
                num_scalar_prefetch=1,
                grid=grid,
                in_specs=[pl.BlockSpec((tile_rows, cols),
                                       lambda i, seed_ref: (i, 0))],
                out_specs=pl.BlockSpec((tile_rows, cols),
                                       lambda i, seed_ref: (i, 0)),
            ),
            compiler_params=pltpu.CompilerParams(
                dimension_semantics=("parallel",),
                vmem_limit_bytes=vmem_limit,
            ),
        )(seed_arr, x2d)
    else:
        # Hardware PRNG primitives don't lower off-TPU: generate N(0,1) outside
        # and only fuse the elementwise scale/add in the kernel.
        z2d = jax.random.normal(jax.random.PRNGKey(seed), x2d.shape, dtype=x2d.dtype)
        kern = functools.partial(_gaussian_noise_fallback_kernel, sigma=float(sigma))
        pc_kwargs = dict(
            out_shape=jax.ShapeDtypeStruct(x2d.shape, x2d.dtype),
            grid=grid,
            in_specs=[pl.BlockSpec((tile_rows, cols), lambda i: (i, 0)),
                      pl.BlockSpec((tile_rows, cols), lambda i: (i, 0))],
            out_specs=pl.BlockSpec((tile_rows, cols), lambda i: (i, 0)),
        )
        try:
            out2d = pl.pallas_call(kern, **pc_kwargs)(x2d, z2d)
        except Exception:
            out2d = pl.pallas_call(kern, interpret=True, **pc_kwargs)(x2d, z2d)

    out = out2d.reshape(-1)
    if padded != total:
        out = out[:total]
    return out.reshape(orig_shape).astype(orig_dtype)


if __name__ == "__main__":
    key = jax.random.PRNGKey(0)
    # NCHW, matching a typical conv activation the module would see.
    x = jax.random.normal(key, (2, 4, 16, 16), dtype=jnp.float32)
    sigma = 0.01

    out = jax.block_until_ready(gaussian_noise(x, sigma=sigma, training=True, seed=42))

    assert out.shape == x.shape and out.dtype == x.dtype
    assert bool(jnp.all(jnp.isfinite(out)))
    # Noise is nonzero ...
    assert float(jnp.max(jnp.abs(out - x))) > 0.0

    # out = x * (1 + sigma*z)  =>  z_hat = (out - x) / (sigma * x) should be ~N(0, 1).
    mask = jnp.abs(x) > 1e-4
    z_hat = jnp.where(mask, (out - x) / (sigma * x), 0.0)
    n_valid = jnp.sum(mask)
    z_mean = jnp.sum(z_hat) / n_valid
    z_var = jnp.sum(jnp.where(mask, (z_hat - z_mean) ** 2, 0.0)) / n_valid
    z_std = float(z_var) ** 0.5
    assert abs(float(z_mean)) < 0.15, float(z_mean)
    assert 0.7 < z_std < 1.3, z_std
    # With sigma=0.01 the relative perturbation stays small.
    assert float(jnp.max(jnp.abs(z_hat))) * sigma < 0.2

    # Eval mode / sigma == 0 must be the identity.
    out_eval = jax.block_until_ready(gaussian_noise(x, training=False))
    assert bool(jnp.all(out_eval == x))
    out_zero = jax.block_until_ready(gaussian_noise(x, sigma=0.0, training=True))
    assert bool(jnp.all(out_zero == x))

    print("KERNEL_OK")
</pallas_src>

<mosaic_0001>
module attributes {stable_mosaic.version = 11 : i64} {
  func.func @_gaussian_noise_fallback_kernel(%arg0: i32, %arg1: memref<2x1024xf32, #tpu.memory_space<vmem>>, %arg2: memref<2x1024xf32, #tpu.memory_space<vmem>>, %arg3: memref<2x1024xf32, #tpu.memory_space<vmem>>) attributes {dimension_semantics = [#tpu.dimension_semantics<arbitrary>], iteration_bounds = array<i64: 1>, scalar_prefetch = 0 : i64, scratch_operands = 0 : i64, tpu.core_type = #tpu.core_type<tc>, window_params = [{transform_indices = @transform_0, window_bounds = array<i64: 2, 1024>}, {transform_indices = @transform_1, window_bounds = array<i64: 2, 1024>}, {transform_indices = @transform_2, window_bounds = array<i64: 2, 1024>}]} {
    %c0 = arith.constant 0 : index
    %c0_0 = arith.constant 0 : index
    %0 = vector.load %arg1[%c0, %c0_0] : memref<2x1024xf32, #tpu.memory_space<vmem>>, vector<2x1024xf32>
    %c0_1 = arith.constant 0 : index
    %c0_2 = arith.constant 0 : index
    %1 = vector.load %arg2[%c0_1, %c0_2] : memref<2x1024xf32, #tpu.memory_space<vmem>>, vector<2x1024xf32>
    %cst = arith.constant 0.00999999977 : f32
    %2 = vector.broadcast %cst : f32 to vector<2x1024xf32>
    %3 = arith.mulf %2, %1 : vector<2x1024xf32>
    %cst_3 = arith.constant 1.000000e+00 : f32
    %4 = vector.broadcast %cst_3 : f32 to vector<2x1024xf32>
    %5 = arith.addf %4, %3 : vector<2x1024xf32>
    %6 = arith.mulf %0, %5 : vector<2x1024xf32>
    %c0_4 = arith.constant 0 : index
    %c0_5 = arith.constant 0 : index
    %7 = vector.load %arg3[%c0_4, %c0_5] : memref<2x1024xf32, #tpu.memory_space<vmem>>, vector<2x1024xf32>
    tpu.vector_store %arg3[%c0_4, %c0_5], %6 {strides = array<i32>} : memref<2x1024xf32, #tpu.memory_space<vmem>>, vector<2x1024xf32>,
    return
  }
  func.func @transform_0(%arg0: i32) -> (i32, i32) {
    %c0_i32 = arith.constant 0 : i32
    %c0_i32_0 = arith.constant 0 : i32
    return %arg0, %c0_i32 : i32, i32
  }
  func.func @transform_1(%arg0: i32) -> (i32, i32) {
    %c0_i32 = arith.constant 0 : i32
    %c0_i32_0 = arith.constant 0 : i32
    return %arg0, %c0_i32 : i32, i32
  }
  func.func @transform_2(%arg0: i32) -> (i32, i32) {
    %c0_i32 = arith.constant 0 : i32
    %c0_i32_0 = arith.constant 0 : i32
    return %arg0, %c0_i32 : i32, i32
  }
}

</mosaic_0001>

<bundles_post_ra>
// kernel: tpu_custom_call.1
= control target key start
LH: loop header
LB: loop body
LE: loop exit
PB: predicated region body
PF: predicated region fallthrough
CT: control target
= control target key end

     0   :  { %7 = vsyncpa [#allocation3], 0  ;;  %s193_s0 = inlined_call_operand.hbm [shape: f32[2,1024], index: 0, kind: input, shape index: {}]   ;;  %s194_s1 = inlined_call_operand.hbm [shape: f32[2,1024], index: 1, kind: input, shape index: {}]   ;;  %s195_s2 = inlined_call_operand.hbm [shape: f32[2,1024], index: 2, kind: output, shape index: {}]  }
   0x1   :  { %8 = vsyncpa [#allocation6], 0 }
   0x2   :  { %9 = vsyncpa [#allocation4], 0  ;;  %s139_s9 = smov [#allocation2]   ;;  %s140_s11 = smov [#allocation5]  }
   0x3   :  { %s16_s10 = sshll.u32 %s139_s9, 4  ;;  %s26_s12 = sshll.u32 %s140_s11, 4  ;;  %s17_s10 = int_to_ptr.vmem [resolvable:$true] %s16_s10  ;;  %s27_s12 = int_to_ptr.vmem [resolvable:$true] %s26_s12 }
   0x4   :  { %s67_s15 = scalar_lea.hbm %s193_s0, 256 }
   0x5   :  { %p68_p0 = scmp.ne.s32.totalorder %s193_s0, %s67_s15  ;;  %p71_p1 = scmp.lt.u32.totalorder %s67_s15, %s193_s0 }
   0x7   :  { %p73_p2 = pnand %p71_p1, %p68_p0 }
   0x9   :  { %76 = shalt.err (!%p73_p2)
}
   0xa   :  { %s77_s20 = scalar_lea.vmem %s17_s10, 256  ;;  %p82_p4 = scmp.lt.s32.totalorder %s17_s10, %s17_s10 }
   0xb   :  { %p78_p3 = scmp.ne.s32.totalorder %s17_s10, %s77_s20  ;;  %p83_p5 = scmp.lt.s32.totalorder %s77_s20, %s77_s20 }
   0xd   :  { %p84_p6 = por %p83_p5, %p82_p4 }
   0xf   :  { %p85_p7 = pnand %p84_p6, %p78_p3 }
  0x11   :  { %88 = shalt.err (!%p85_p7)
}
  0x12   :  { %19 = dma.hbm_to_vmem [thread:$0]  %s193_s0, 256, %s17_s10, [#allocation3]  }
  0x13   :  { %s89_s25 = scalar_lea.hbm %s194_s1, 256 }
  0x14   :  { %p90_p8 = scmp.ne.s32.totalorder %s194_s1, %s89_s25  ;;  %p93_p9 = scmp.lt.u32.totalorder %s89_s25, %s194_s1 }
  0x16   :  { %p95_p10 = pnand %p93_p9, %p90_p8 }
  0x18   :  { %98 = shalt.err (!%p95_p10)
}
  0x19   :  { %s99_s30 = scalar_lea.vmem %s27_s12, 256  ;;  %p104_p12 = scmp.lt.s32.totalorder %s27_s12, %s27_s12 }
  0x1a   :  { %p100_p11 = scmp.ne.s32.totalorder %s27_s12, %s99_s30  ;;  %p105_p13 = scmp.lt.s32.totalorder %s99_s30, %s99_s30 }
  0x1c   :  { %p106_p0 = por %p105_p13, %p104_p12 }
  0x1e   :  { %p107_p1 = pnand %p106_p0, %p100_p11 }
  0x20   :  { %110 = shalt.err (!%p107_p1)
}
  0x21   :  { %29 = dma.hbm_to_vmem [thread:$0]  %s194_s1, 256, %s27_s12, [#allocation6]  }
  0x22   :  { %133 = dma.done.wait [#allocation3], 256  }
  0x23   :  { %134 = vsyncadd [#allocation3], 4294967040 }
  0x24   :  { %135 = dma.done.wait [#allocation6], 256  }
  0x25   :  { %136 = vsyncadd [#allocation6], 4294967040  ;;  %v38_v0 = vld [vmem:[#allocation5] sm:$0xff]  ;;  %v39_v2 = vld [vmem:[#allocation5 + $0x8] sm:$0xff]  ;;  %s141_s4 = smov [#allocation7]  }
  0x26   :  { %v40_v1 = vmul.f32 0.01, %v38_v0  ;;  %v36_v3 = vld [vmem:[#allocation2] sm:$0xff]  ;;  %v41_v4 = vmul.f32 0.01, %v39_v2  ;;  %v37_v6 = vld [vmem:[#allocation2 + $0x8] sm:$0xff] }
  0x27   :  { %s54_s5 = sshll.u32 %s141_s4, 4  ;;  %s55_s5 = int_to_ptr.vmem [resolvable:$true] %s54_s5 }
  0x28   :  { %v42_v5 = vadd.f32 1.0, %v40_v1  ;;  %v43_v7 = vadd.f32 1.0, %v41_v4  ;;  %s111_s1 = scalar_lea.vmem %s55_s5, 256  ;;  %p116_p3 = scmp.lt.s32.totalorder %s55_s5, %s55_s5 }
  0x29   :  { %p112_p2 = scmp.ne.s32.totalorder %s55_s5, %s111_s1  ;;  %p117_p4 = scmp.lt.s32.totalorder %s111_s1, %s111_s1 }
  0x2a   :  { %v44_v8 = vmul.f32 %v42_v5, %v36_v3  ;;  %v45_v9 = vmul.f32 %v43_v7, %v37_v6 }
  0x2b   :  { %p118_p5 = por %p117_p4, %p116_p3 }
  0x2c   :  { %46 = vst [vmem:[#allocation7] sm:$0xff] %v44_v8  ;;  %47 = vst [vmem:[#allocation7 + $0x8] sm:$0xff] %v45_v9 }
  0x2d   :  { %p119_p6 = pnand %p118_p5, %p112_p2 }
  0x2f   :  { %122 = shalt.err (!%p119_p6)
}
  0x30   :  { %s123_s8 = scalar_lea.hbm %s195_s2, 256 }
  0x31   :  { %p124_p7 = scmp.ne.s32.totalorder %s195_s2, %s123_s8  ;;  %p127_p8 = scmp.lt.u32.totalorder %s123_s8, %s195_s2 }
  0x33   :  { %p129_p9 = pnand %p127_p8, %p124_p7 }
  0x35   :  { %132 = shalt.err (!%p129_p9)
}
  0x36   :  { %57 = dma.vmem_to_hbm [thread:$0]  %s55_s5, 256, %s195_s2, [#allocation4]  }
  0x37   :  { %137 = dma.done.wait [#allocation4], 256  }
  0x38   :  { %138 = vsyncadd [#allocation4], 4294967040 }
  0x39   :  { %61 = vsyncpa [#allocation3], 1 }
  0x3a   :  { %62 = vsyncpa [#allocation6], 1 }
  0x3b   :  { %63 = vsyncpa [#allocation4], 1 }

</bundles_post_ra>
